<compile_context>
chip_gen: v7x
topology: tpu7x:2x2x1
jax: 0.10.0
libtpu: 0.0.40
codegen_flags: <defaults>
</compile_context>

<pallas_src>
import jax
import jax.numpy as jnp
from jax.experimental import pallas as pl
from jax.experimental.pallas import tpu as pltpu


# ---------------------------------------------------------------------------
# Kernels
# ---------------------------------------------------------------------------

def _proj_kernel(cond_ref, wa_ref, ba_ref, wm_ref, bm_ref, add_ref, scale_ref):
    # cond : (B, D)   conditioning for the whole batch
    # wa   : (D, C), ba: (1, C)   additive projection
    # wm   : (D, C), bm: (1, C)   multiplicative projection
    # add  : (B, C)   FiLM shift
    # scale: (B, C)   FiLM scale = 1 + mult   (folded here, not in the wrapper)
    cond = cond_ref[...]
    add_ref[...] = (
        jnp.dot(cond, wa_ref[...], preferred_element_type=jnp.float32)
        + ba_ref[...]
    )
    scale_ref[...] = (
        jnp.dot(cond, wm_ref[...], preferred_element_type=jnp.float32)
        + bm_ref[...]
        + 1.0
    )


def _film_kernel(add_ref, scale_ref, x_ref, o_ref):
    # Pure VPU streaming FiLM.  Works for both layouts:
    #   rank-4 flattened: add/scale (r_tile, 1),    x (r_tile, s_tile)
    #   rank-3 chan-last: add/scale (1, 1, C),      x (1, t_tile, C)
    # Compute dtype follows scale/add (f32, or bf16 when features are bf16).
    x = x_ref[...].astype(scale_ref.dtype)
    o_ref[...] = (scale_ref[...] * x + add_ref[...]).astype(o_ref.dtype)


def _film_rank2_kernel(cond_ref, wa_ref, ba_ref, wm_ref, bm_ref, x_ref, o_ref):
    # Tiny rank-2 case: projections + FiLM fused into one call (no grid, no
    # 1-lane masked-store streaming kernel).
    cond = cond_ref[...]
    add = jnp.dot(cond, wa_ref[...], preferred_element_type=jnp.float32) + ba_ref[...]
    scale = (
        jnp.dot(cond, wm_ref[...], preferred_element_type=jnp.float32)
        + bm_ref[...]
        + 1.0
    )
    o_ref[...] = (scale * x_ref[...].astype(jnp.float32) + add).astype(o_ref.dtype)


# ---------------------------------------------------------------------------
# Chip-aware tiling
# ---------------------------------------------------------------------------

def _round_up(x, m):
    return ((x + m - 1) // m) * m


def _chip_tile_config():
    """Returns (per-block byte budget, vmem_limit_bytes) for this chip.

    v7x: 64 MiB VMEM/TC but ~3.2 TB/s HBM -> bigger (12 MiB) blocks amortize
    the ~0.35 us per-grid-step overhead; 2*(in)+2*(out) = 48 MiB < 56 MiB limit.
    v5e/v6e: 128 MiB physical; 6 MiB blocks (measured HBM-roofline plateau) and
    an explicit 48 MiB scoped limit so v5e's 16 MiB *default* never OOMs.
    """
    try:
        vmem_cap = pltpu.get_tpu_info().vmem_capacity_bytes
    except Exception:  # pragma: no cover - conservative fallback
        vmem_cap = 128 << 20
    if vmem_cap <= (64 << 20):          # v7x
        return 12 << 20, 56 << 20
    return 6 << 20, 48 << 20            # v5e / v6e


def _pick_tiles(R, S, itemsize, budget):
    """Pick (r_tile, s_tile) for the flattened (R, S) feature slab.

    Constraints: r_tile multiple of 8 or == R; s_tile multiple of 128 or == S;
    r_tile * s_tile * itemsize <= budget.  Ragged last blocks are fine
    (grid uses pl.cdiv).  Prefers >= 2 grid steps so a v7x megacore can shard
    the stream over both TensorCores (one extra ~0.35 us step elsewhere).
    """
    if R * S * itemsize <= budget:
        r_tile, s_tile = R, S
        if S >= 256:
            s_tile = _round_up(pl.cdiv(S, 2), 128)
        elif R >= 16:
            r_tile = _round_up(pl.cdiv(R, 2), 8)
        return r_tile, s_tile
    if R * 128 * itemsize <= budget:
        # Keep all rows resident; tile the lane (spatial) axis in 128-multiples.
        s_tile = max(128, (budget // (R * itemsize)) // 128 * 128)
        return R, min(s_tile, _round_up(S, 128))
    # Very large B*C: tile rows too.
    s_tile = 128 if S >= 128 else S
    r_tile = max(8, (budget // (s_tile * itemsize)) // 8 * 8)
    return min(r_tile, _round_up(R, 8)), s_tile


# ---------------------------------------------------------------------------
# Wrapper
# ---------------------------------------------------------------------------

def film_conditioning_pallas(conv_filters, conditioning, params):
    """FiLM conditioning. conv_filters rank 2 (B,C), 3 (B,T,C) or 4 (NCHW)."""
    assert conditioning.ndim == 2
    B, _ = conditioning.shape
    w_add, b_add = params["w_add"], params["b_add"]
    w_mult, b_mult = params["w_mult"], params["b_mult"]
    C = w_add.shape[1]
    rank = conv_filters.ndim
    itemsize = jnp.dtype(conv_filters.dtype).itemsize
    budget, vmem_limit = _chip_tile_config()
    compute_dtype = (jnp.bfloat16 if conv_filters.dtype == jnp.bfloat16
                     else jnp.float32)

    # ---- rank-2: one fully fused kernel, no streaming grid ------------------
    if rank == 2:
        assert conv_filters.shape == (B, C)
        return pl.pallas_call(
            _film_rank2_kernel,
            out_shape=jax.ShapeDtypeStruct((B, C), conv_filters.dtype),
        )(conditioning, w_add, b_add, w_mult, b_mult, conv_filters)

    # ---- hoisted projection: runs once, emits add and scale = 1 + mult ------
    add, scale = pl.pallas_call(
        _proj_kernel,
        out_shape=(jax.ShapeDtypeStruct((B, C), jnp.float32),
                   jax.ShapeDtypeStruct((B, C), jnp.float32)),
    )(conditioning, w_add, b_add, w_mult, b_mult)

    if rank == 4:
        # Flatten NCHW -> (B*C, H*W): free contiguous reshape, full sublane
        # occupancy even for tiny C, lane-dense (128-multiple) stores.
        Bx, Cx, H, W = conv_filters.shape
        assert Bx == B and Cx == C
        R, S = B * C, H * W
        x = conv_filters.reshape(R, S)
        add2 = add.reshape(R, 1).astype(compute_dtype)
        scale2 = scale.reshape(R, 1).astype(compute_dtype)

        r_tile, s_tile = _pick_tiles(R, S, itemsize, budget)
        grid = (pl.cdiv(R, r_tile), pl.cdiv(S, s_tile))

        out = pl.pallas_call(
            _film_kernel,
            out_shape=jax.ShapeDtypeStruct((R, S), conv_filters.dtype),
            grid=grid,
            in_specs=[
                pl.BlockSpec((r_tile, 1), lambda r, s: (r, 0)),        # add
                pl.BlockSpec((r_tile, 1), lambda r, s: (r, 0)),        # 1+mult
                pl.BlockSpec((r_tile, s_tile), lambda r, s: (r, s)),   # x
            ],
            out_specs=pl.BlockSpec((r_tile, s_tile), lambda r, s: (r, s)),
            compiler_params=pltpu.CompilerParams(
                dimension_semantics=("parallel", "parallel"),
                vmem_limit_bytes=vmem_limit),
            cost_estimate=pl.CostEstimate(
                flops=2 * R * S, transcendentals=0,
                bytes_accessed=2 * R * S * itemsize),
        )(add2, scale2, x)
        return out.reshape(B, C, H, W)

    if rank == 3:
        # Channels-last (B, T, C): broadcast per-(b, c) scale/shift over T.
        # TODO(synk): for very small C this layout is lane-sparse; scale varies
        # along C so the (B*C, S) row trick above does not apply here.
        Bx, T, Cx = conv_filters.shape
        assert Bx == B and Cx == C
        add3 = add.reshape(B, 1, C).astype(compute_dtype)
        scale3 = scale.reshape(B, 1, C).astype(compute_dtype)

        if T * C * itemsize <= budget:
            t_tile = T
        else:
            t_tile = max(8, (budget // (C * itemsize)) // 8 * 8)
        grid = (B, pl.cdiv(T, t_tile))

        return pl.pallas_call(
            _film_kernel,
            out_shape=jax.ShapeDtypeStruct((B, T, C), conv_filters.dtype),
            grid=grid,
            in_specs=[
                pl.BlockSpec((1, 1, C), lambda b, t: (b, 0, 0)),
                pl.BlockSpec((1, 1, C), lambda b, t: (b, 0, 0)),
                pl.BlockSpec((1, t_tile, C), lambda b, t: (b, t, 0)),
            ],
            out_specs=pl.BlockSpec((1, t_tile, C), lambda b, t: (b, t, 0)),
            compiler_params=pltpu.CompilerParams(
                dimension_semantics=("parallel", "parallel"),
                vmem_limit_bytes=vmem_limit),
        )(add3, scale3, conv_filters)

    raise ValueError(f"conv_filters rank must be 2, 3, or 4; got {rank}")


# ---------------------------------------------------------------------------
# Pure-JAX reference (matches the PyTorch forward exactly)
# ---------------------------------------------------------------------------

def film_conditioning_ref(conv_filters, conditioning, params):
    add = conditioning @ params["w_add"] + params["b_add"][0]     # (B, C)
    mult = conditioning @ params["w_mult"] + params["b_mult"][0]  # (B, C)
    if conv_filters.ndim == 4:
        add = add[:, :, None, None]
        mult = mult[:, :, None, None]
    elif conv_filters.ndim == 3:
        add = add[:, None, :]
        mult = mult[:, None, :]
    return (1.0 + mult) * conv_filters + add


if __name__ == "__main__":
    B, C, H, W = 2, 4, 16, 16   # batch, num_channels, spatial
    D = 32                      # in_dim (conditioning width)
    T = 8                       # seq length for the rank-3 path

    key = jax.random.PRNGKey(0)
    k1, k2, k3, k4, k5, k6, k7, k8 = jax.random.split(key, 8)

    # PyTorch Linear weight is (C, D); we store the transpose (D, C).
    params = {
        "w_add":  0.1 * jax.random.normal(k1, (D, C), jnp.float32),
        "b_add":  0.1 * jax.random.normal(k2, (1, C), jnp.float32),
        "w_mult": 0.1 * jax.random.normal(k3, (D, C), jnp.float32),
        "b_mult": 0.1 * jax.random.normal(k4, (1, C), jnp.float32),
    }
    conditioning = jax.random.normal(k5, (B, D), jnp.float32)

    # rank-4 path (NCHW)
    x4 = jax.random.normal(k6, (B, C, H, W), jnp.float32)
    out4 = jax.block_until_ready(film_conditioning_pallas(x4, conditioning, params))
    ref4 = film_conditioning_ref(x4, conditioning, params)
    assert out4.shape == x4.shape
    assert jnp.allclose(out4, ref4, atol=1e-5, rtol=1e-5), "rank-4 mismatch"

    # rank-3 path (B, T, C)
    x3 = jax.random.normal(k7, (B, T, C), jnp.float32)
    out3 = jax.block_until_ready(film_conditioning_pallas(x3, conditioning, params))
    ref3 = film_conditioning_ref(x3, conditioning, params)
    assert out3.shape == x3.shape
    assert jnp.allclose(out3, ref3, atol=1e-5, rtol=1e-5), "rank-3 mismatch"

    # rank-2 path (B, C)
    x2 = jax.random.normal(k8, (B, C), jnp.float32)
    out2 = jax.block_until_ready(film_conditioning_pallas(x2, conditioning, params))
    ref2 = film_conditioning_ref(x2, conditioning, params)
    assert out2.shape == x2.shape
    assert jnp.allclose(out2, ref2, atol=1e-5, rtol=1e-5), "rank-2 mismatch"

    print("KERNEL_OK")
</pallas_src>

<mosaic_0001>
module attributes {stable_mosaic.version = 11 : i64} {
  func.func @_proj_kernel(%arg0: memref<2x32xf32, #tpu.memory_space<vmem>>, %arg1: memref<32x4xf32, #tpu.memory_space<vmem>>, %arg2: memref<1x4xf32, #tpu.memory_space<vmem>>, %arg3: memref<32x4xf32, #tpu.memory_space<vmem>>, %arg4: memref<1x4xf32, #tpu.memory_space<vmem>>, %arg5: memref<2x4xf32, #tpu.memory_space<vmem>>, %arg6: memref<2x4xf32, #tpu.memory_space<vmem>>) attributes {dimension_semantics = [], scalar_prefetch = 0 : i64, scratch_operands = 0 : i64, tpu.core_type = #tpu.core_type<tc>} {
    %c0 = arith.constant 0 : index
    %c0_0 = arith.constant 0 : index
    %0 = vector.load %arg0[%c0, %c0_0] : memref<2x32xf32, #tpu.memory_space<vmem>>, vector<2x32xf32>
    %c0_1 = arith.constant 0 : index
    %c0_2 = arith.constant 0 : index
    %1 = vector.load %arg1[%c0_1, %c0_2] : memref<32x4xf32, #tpu.memory_space<vmem>>, vector<32x4xf32>
    %cst = arith.constant dense<0.000000e+00> : vector<2x4xf32>
    %2 = tpu.matmul %0, %1, %cst {dimension_numbers = #tpu.dot_dimension_numbers<[1], [0], [0], [1], [0, 0, 1, 1], [], []>} : vector<2x32xf32>, vector<32x4xf32>, vector<2x4xf32> -> vector<2x4xf32>
    %c0_3 = arith.constant 0 : index
    %c0_4 = arith.constant 0 : index
    %3 = vector.load %arg2[%c0_3, %c0_4] : memref<1x4xf32, #tpu.memory_space<vmem>>, vector<1x4xf32>
    %4 = vector.broadcast %3 : vector<1x4xf32> to vector<2x4xf32>
    %5 = arith.addf %2, %4 : vector<2x4xf32>
    %c0_5 = arith.constant 0 : index
    %c0_6 = arith.constant 0 : index
    %6 = vector.load %arg5[%c0_5, %c0_6] : memref<2x4xf32, #tpu.memory_space<vmem>>, vector<2x4xf32>
    tpu.vector_store %arg5[%c0_5, %c0_6], %5 {strides = array<i32>} : memref<2x4xf32, #tpu.memory_space<vmem>>, vector<2x4xf32>,
    %c0_7 = arith.constant 0 : index
    %c0_8 = arith.constant 0 : index
    %7 = vector.load %arg3[%c0_7, %c0_8] : memref<32x4xf32, #tpu.memory_space<vmem>>, vector<32x4xf32>
    %cst_9 = arith.constant dense<0.000000e+00> : vector<2x4xf32>
    %8 = tpu.matmul %0, %7, %cst_9 {dimension_numbers = #tpu.dot_dimension_numbers<[1], [0], [0], [1], [0, 0, 1, 1], [], []>} : vector<2x32xf32>, vector<32x4xf32>, vector<2x4xf32> -> vector<2x4xf32>
    %c0_10 = arith.constant 0 : index
    %c0_11 = arith.constant 0 : index
    %9 = vector.load %arg4[%c0_10, %c0_11] : memref<1x4xf32, #tpu.memory_space<vmem>>, vector<1x4xf32>
    %10 = vector.broadcast %9 : vector<1x4xf32> to vector<2x4xf32>
    %11 = arith.addf %8, %10 : vector<2x4xf32>
    %cst_12 = arith.constant 1.000000e+00 : f32
    %12 = vector.broadcast %cst_12 : f32 to vector<2x4xf32>
    %13 = arith.addf %11, %12 : vector<2x4xf32>
    %c0_13 = arith.constant 0 : index
    %c0_14 = arith.constant 0 : index
    %14 = vector.load %arg6[%c0_13, %c0_14] : memref<2x4xf32, #tpu.memory_space<vmem>>, vector<2x4xf32>
    tpu.vector_store %arg6[%c0_13, %c0_14], %13 {strides = array<i32>} : memref<2x4xf32, #tpu.memory_space<vmem>>, vector<2x4xf32>,
    return
  }
}

</mosaic_0001>

<bundles_post_ra>
// kernel: tpu_custom_call.1
= control target key start
LH: loop header
LB: loop body
LE: loop exit
PB: predicated region body
PF: predicated region fallthrough
CT: control target
= control target key end

     0   :  { %12 = vsyncpa [#allocation3], 0  ;;  %v324_v3 = vmov 0.0|0.0   ;;  %vm325_vm0 = vmmov 0   ;;  %v326_v11 = vmov 0.0   ;;  %s423_s0 = inlined_call_operand.vmem [shape: f32[2,32], index: 0, kind: input, shape index: {}]   ;;  %s424_s1 = inlined_call_operand.vmem [shape: f32[32,4], index: 1, kind: input, shape index: {}]   ;;  %s425_s2 = inlined_call_operand.vmem [shape: f32[1,4], index: 2, kind: input, shape index: {}]   ;;  %s426_s3 = inlined_call_operand.vmem [shape: f32[32,4], index: 3, kind: input, shape index: {}]   ;;  %s427_s4 = inlined_call_operand.vmem [shape: f32[1,4], index: 4, kind: input, shape index: {}]   ;;  %s428_s5 = inlined_call_operand.hbm [shape: f32[2,4], index: 5, kind: output, shape index: {0}]   ;;  %s429_s6 = inlined_call_operand.hbm [shape: f32[2,4], index: 6, kind: output, shape index: {1}]  }
   0x1   :  { %v112_v0 = vld [vmem:[%s426_s3] sm:$0xff]  ;;  %v113_v1 = vld [vmem:[%s426_s3 + $0x8] sm:$0xff]  ;;  %265 = vmatprep.subr.bf16.mxu1 %v324_v3  ;;  %259 = vmatprep.subr.bf16.mxu0 %v324_v3  ;;  %v114_v6 = vld [vmem:[%s426_s3 + $0x10] sm:$0xff] }
   0x2   :  { %v25_v2 = vld [vmem:[%s424_s1] sm:$0xff]  ;;  %v266_v4 = vpack.c.bf16 %v113_v1, %v112_v0  ;;  %v26_v5 = vld [vmem:[%s424_s1 + $0x8] sm:$0xff]  ;;  %v115_v7 = vld [vmem:[%s426_s3 + $0x18] sm:$0xff]  ;;  %256 = vmatprep.mubr.msk.f32.mxu1 %vm325_vm0, %v326_v11  ;;  %245 = vmatprep.mubr.msk.f32.mxu0 %vm325_vm0, %v326_v11 }
   0x3   :  { %v260_v8 = vpack.c.bf16 %v26_v5, %v25_v2  ;;  %v27_v9 = vld [vmem:[%s424_s1 + $0x10] sm:$0xff]  ;;  %v28_v10 = vld [vmem:[%s424_s1 + $0x18] sm:$0xff]  ;;  %v269_v12 = vpack.c.bf16 %v115_v7, %v114_v6 }
   0x4   :  { %267 = vmatpush3.bf16.msra.mxu1 %v266_v4 }
   0x5   :  { %13 = vsyncpa [#allocation5], 0  ;;  %261 = vmatpush3.bf16.msra.mxu0 %v260_v8  ;;  %268 = vmatprep.subr.bf16.mxu1 %v324_v3  ;;  %v263_v13 = vpack.c.bf16 %v28_v10, %v27_v9  ;;  %v24_v14 = vld [vmem:[%s423_s0] sm:$0x3]  ;;  %vm36_vm1 = vcmask 261120   ;;  %s327_s17 = smov [#allocation2]  }
   0x6   :  { %262 = vmatprep.subr.bf16.mxu0 %v324_v3  ;;  %v225_v15 = vld [vmem:[%s427_s4] ss:$0 sm:$0xff]  ;;  %s201_s18 = sshll.u32 %s327_s17, 4  ;;  %s328_s19 = smov [#allocation4]   ;;  %vm110_vm2 = vcmask 25600   ;;  %s202_s18 = int_to_ptr.vmem [resolvable:$true] %s201_s18 }
   0x7   :  { %v223_v16 = vld [vmem:[%s425_s2] ss:$0 sm:$0xff]  ;;  %s211_s20 = sshll.u32 %s328_s19, 4  ;;  %s276_s0 = scalar_lea.vmem %s202_s18, 32  ;;  %s212_s20 = int_to_ptr.vmem [resolvable:$true] %s211_s20 }
   0x8   :  { %270 = vmatpush3.bf16.msra.mxu1 %v269_v12  ;;  %p277_p0 = scmp.ne.s32.totalorder %s202_s18, %s276_s0  ;;  %p281_p1 = scmp.lt.s32.totalorder %s202_s18, %s202_s18 }
   0x9   :  { %264 = vmatpush3.bf16.msra.mxu0 %v263_v13  ;;  %p282_p2 = scmp.lt.s32.totalorder %s276_s0, %s276_s0 }
   0xb   :  { %257 = vmatmul.mubr.msk.f32.vlgmr.msra.gmra.mrb[0].mxu1 %vm36_vm1, %v24_v14  ;;  %p283_p3 = por %p282_p2, %p281_p1 }
   0xc   :  { %246 = vmatmul.mubr.msk.f32.vlgmr.msra.gmra.mrb[0].mxu0 %vm36_vm1, %v24_v14 }
   0xd   :  { %p284_p4 = pnand %p283_p3, %p277_p0 }
  0xde   :  { %v189_v17 = vpop.f32.mrb[0].mxu1 }
  0xdf   :  { %v190_v18 = vadd.f32 %v225_v15, %v189_v17  ;;  %v106_v19 = vpop.f32.mrb[0].mxu0  ;;  %v258_v20 = vpop.f32.mrb[1].mxu1 }
  0xe0   :  { %v107_v21 = vadd.f32 %v223_v16, %v106_v19  ;;  %v247_v22 = vpop.f32.mrb[1].mxu0 }
  0xe1   :  { %v193_v23 = vadd.f32 1.0, %v190_v18 }
  0xe2   :  { %111 = vst.msk [vmem:[#allocation2] sm:$0x3] %vm110_vm2, %v107_v21 }
  0xe3   :  { %287 = shalt.err (!%p284_p4)
}
  0xe4   :  { %s288_s21 = scalar_lea.hbm %s428_s5, 32 }
  0xe5   :  { %p289_p5 = scmp.ne.s32.totalorder %s428_s5, %s288_s21  ;;  %p292_p6 = scmp.lt.u32.totalorder %s288_s21, %s428_s5 }
  0xe7   :  { %p294_p7 = pnand %p292_p6, %p289_p5 }
  0xe9   :  { %297 = shalt.err (!%p294_p7)
}
  0xea   :  { %204 = dma.vmem_to_hbm [thread:$0]  %s202_s18, 32, %s428_s5, [#allocation3]   ;;  %194 = vst.msk [vmem:[#allocation4] sm:$0x3] %vm110_vm2, %v193_v23 }
  0xeb   :  { %s298_s28 = scalar_lea.vmem %s212_s20, 32  ;;  %p303_p9 = scmp.lt.s32.totalorder %s212_s20, %s212_s20 }
  0xec   :  { %p299_p8 = scmp.ne.s32.totalorder %s212_s20, %s298_s28  ;;  %p304_p10 = scmp.lt.s32.totalorder %s298_s28, %s298_s28 }
  0xee   :  { %p305_p11 = por %p304_p10, %p303_p9 }
  0xf0   :  { %p306_p12 = pnand %p305_p11, %p299_p8 }
  0xf2   :  { %309 = shalt.err (!%p306_p12)
}
  0xf3   :  { %s310_s7 = scalar_lea.hbm %s429_s6, 32 }
  0xf4   :  { %p311_p13 = scmp.ne.s32.totalorder %s429_s6, %s310_s7  ;;  %p314_p0 = scmp.lt.u32.totalorder %s310_s7, %s429_s6 }
  0xf6   :  { %p316_p1 = pnand %p314_p0, %p311_p13 }
  0xf8   :  { %319 = shalt.err (!%p316_p1)
}
  0xf9   :  { %214 = dma.vmem_to_hbm [thread:$0]  %s212_s20, 32, %s429_s6, [#allocation5]  }
  0xfa   :  { %320 = dma.done.wait [#allocation3], 32  }
  0xfb   :  { %321 = vsyncadd [#allocation3], 4294967264 }
  0xfc   :  { %322 = dma.done.wait [#allocation5], 32  }
  0xfd   :  { %323 = vsyncadd [#allocation5], 4294967264 }
  0xfe   :  { %221 = vsyncpa [#allocation3], 1 }
  0xff   :  { %222 = vsyncpa [#allocation5], 1 }

</bundles_post_ra>
